<compile_context>
chip_gen: v7x
topology: tpu7x:2x2x1
jax: 0.10.0
libtpu: 0.0.40
codegen_flags: <defaults>
</compile_context>

<pallas_src>
import functools

import jax
import jax.numpy as jnp
from jax.experimental import pallas as pl
from jax.experimental.pallas import tpu as pltpu


def _label_smoothing_kernel(logits_ref, targets_ref, out_ref, *,
                            smoothing, ignore_index, n_valid_rows):
    x = logits_ref[...].astype(jnp.float32)      # (TR, V)
    t = targets_ref[...]                          # (TR, 1) int32
    TR, V = x.shape

    # Row validity: in-range rows of the (possibly partial) last tile AND not
    # ignore_index.  Garbage rows of a partial tile are fully masked here.
    row0 = pl.program_id(0) * TR
    row_id = row0 + jax.lax.broadcasted_iota(jnp.int32, (TR, 1), 0)
    valid = (row_id < n_valid_rows) & (t != ignore_index)      # (TR, 1) bool

    # Numerically-stable log-softmax pieces, without materializing logp:
    #   logp = x - lse;  lp_t = x[target] - lse;  sum(logp) = sum(x) - V*lse
    m = jnp.max(x, axis=-1, keepdims=True)                      # (TR, 1)
    lse = jnp.log(jnp.sum(jnp.exp(x - m), axis=-1, keepdims=True)) + m

    t_clamped = jnp.clip(t, 0, V - 1)            # matches the PyTorch clamp
    col = jax.lax.broadcasted_iota(jnp.int32, x.shape, 1)
    one_hot = col == t_clamped                                   # (TR, V)
    x_t = jnp.sum(jnp.where(one_hot, x, 0.0), axis=-1, keepdims=True)
    sum_x = jnp.sum(x, axis=-1, keepdims=True)
    # NOTE: if a bundle dump ever shows the XLU binding (after the tiling fix),
    # sum_x / sum(exp) can be moved to the idle MXU via jnp.dot(x, ones((V,1))).

    lp_target = x_t - lse                                        # (TR, 1)
    lp_sum = sum_x - jnp.float32(V) * lse                        # (TR, 1)

    # Static branch, mirroring the PyTorch module: smoothing < 0.01 -> plain NLL.
    if smoothing < 0.01:
        eps = 0.0
        confidence = 1.0
    else:
        eps = smoothing / (V - 1)
        confidence = 1.0 - smoothing
    # loss = -(confidence * lp_t + eps * (lp_sum - lp_t))
    loss_row = -(confidence - eps) * lp_target - eps * lp_sum    # (TR, 1)

    loss_row = jnp.where(valid, loss_row, 0.0)   # also kills NaNs from garbage rows
    loss_sum = jnp.sum(loss_row)
    cnt = jnp.sum(valid.astype(jnp.float32))

    # Pack the two per-tile partials into a lane-dense (1, 8, 128) output block:
    # lane 0 = loss sum, lane 1 = valid count, rest zeros.
    sub = jax.lax.broadcasted_iota(jnp.int32, (1, 8, 128), 1)
    lane = jax.lax.broadcasted_iota(jnp.int32, (1, 8, 128), 2)
    blk = (jnp.where((sub == 0) & (lane == 0), loss_sum, 0.0)
           + jnp.where((sub == 0) & (lane == 1), cnt, 0.0))
    out_ref[...] = blk


def improved_label_smoothing_loss(logits, targets, *, smoothing=0.1,
                                  reduction="mean", ignore_index=-100,
                                  tile_rows=None):
    """JAX/Pallas equivalent of ImprovedLabelSmoothingLoss.forward.

    logits:  [B, S, V] float (f32 or bf16 — bf16 halves HBM traffic; math is f32)
    targets: [B, S]    int  (ignore_index marks padding tokens)
    """
    B, S, V = logits.shape
    N = B * S
    logits2 = logits.reshape(N, V)
    targets2 = targets.reshape(N, 1).astype(jnp.int32)

    itemsize = jnp.dtype(logits.dtype).itemsize

    if tile_rows is None:
        # Target ~8 MiB per logits block: big enough for ~85%+ of HBM roofline,
        # small enough that 2 double-buffered copies (+targets+output) stay well
        # inside the scoped-VMEM budget on every generation (v7x: 64 MiB phys).
        target_block_bytes = 8 * 1024 * 1024
        tr = target_block_bytes // (V * itemsize)
        tr = max(8, min(2048, (tr // 8) * 8))
        tr = min(tr, ((N + 7) // 8) * 8)          # don't exceed the row count
        tile_rows = int(tr)
    else:
        tile_rows = int(max(8, ((tile_rows + 7) // 8) * 8))

    num_tiles = -(-N // tile_rows)                # cdiv; last tile may be partial

    # VMEM budget: 2 double-buffered logits blocks + 2 targets blocks (int32
    # column pads to 128 lanes) + output block + generous headroom.
    logits_block_bytes = tile_rows * V * itemsize
    targets_block_bytes = tile_rows * 128 * 4
    needed = (2 * logits_block_bytes + 2 * targets_block_bytes
              + 2 * 8 * 128 * 4 + (8 << 20))
    vmem_limit = int(min(max(needed, 32 << 20), 56 << 20))

    kernel = functools.partial(_label_smoothing_kernel,
                               smoothing=float(smoothing),
                               ignore_index=int(ignore_index),
                               n_valid_rows=int(N))

    partials = pl.pallas_call(
        kernel,
        out_shape=jax.ShapeDtypeStruct((num_tiles, 8, 128), jnp.float32),
        grid=(num_tiles,),
        in_specs=[
            pl.BlockSpec((tile_rows, V), lambda i: (i, 0)),
            pl.BlockSpec((tile_rows, 1), lambda i: (i, 0)),
        ],
        out_specs=pl.BlockSpec((1, 8, 128), lambda i: (i, 0, 0)),
        compiler_params=pltpu.CompilerParams(
            dimension_semantics=("parallel",),
            vmem_limit_bytes=vmem_limit),
    )(logits2, targets2)

    s = jnp.sum(partials[:, 0, 0])
    c = jnp.sum(partials[:, 0, 1])

    if reduction == "mean":
        # mask.sum() == 0 -> 0.0, matching the PyTorch early return
        return jnp.where(c > 0, s / jnp.maximum(c, 1.0), jnp.float32(0.0))
    elif reduction == "sum":
        return s
    else:
        # TODO(synk): reduction='none' returns a dynamically-shaped tensor of
        # only the non-ignored rows in PyTorch; no static-shape Pallas equivalent.
        raise NotImplementedError("reduction='none' not supported")


def _reference_loss(logits, targets, smoothing=0.1, ignore_index=-100):
    """Pure-JAX reference for verification (mean reduction)."""
    B, S, V = logits.shape
    lg = logits.reshape(-1, V).astype(jnp.float32)
    tg = targets.reshape(-1)
    valid = tg != ignore_index
    tg_c = jnp.clip(tg, 0, V - 1)
    logp = jax.nn.log_softmax(lg, axis=-1)
    one_hot = jax.nn.one_hot(tg_c, V, dtype=jnp.float32)
    confidence = 1.0 - smoothing
    smooth = one_hot * confidence + (1.0 - one_hot) * smoothing / (V - 1)
    loss = -jnp.sum(smooth * logp, axis=-1)
    loss = jnp.where(valid, loss, 0.0)
    c = jnp.sum(valid.astype(jnp.float32))
    return jnp.where(c > 0, jnp.sum(loss) / jnp.maximum(c, 1.0), 0.0)


if __name__ == "__main__":
    key = jax.random.PRNGKey(0)
    k1, k2, k3 = jax.random.split(key, 3)

    B, S, V = 2, 8, 128   # small shapes: batch=2, seq=8, vocab=128
    logits = jax.random.normal(k1, (B, S, V), dtype=jnp.float32)
    targets = jax.random.randint(k2, (B, S), 0, V, dtype=jnp.int32)
    # sprinkle some ignore_index tokens
    ignore_mask = jax.random.bernoulli(k3, p=0.25, shape=(B, S))
    targets = jnp.where(ignore_mask, jnp.int32(-100), targets)

    loss = improved_label_smoothing_loss(logits, targets,
                                         smoothing=0.1,
                                         reduction="mean",
                                         ignore_index=-100)
    loss = jax.block_until_ready(loss)

    ref = _reference_loss(logits, targets, smoothing=0.1, ignore_index=-100)
    assert jnp.allclose(loss, ref, atol=1e-5, rtol=1e-4), (loss, ref)

    print("KERNEL_OK")
</pallas_src>

<mosaic_0001>
module attributes {stable_mosaic.version = 11 : i64} {
  func.func @_label_smoothing_kernel(%arg0: i32, %arg1: memref<16x128xf32, #tpu.memory_space<vmem>>, %arg2: memref<16x1xi32, #tpu.memory_space<vmem>>, %arg3: memref<1x8x128xf32, #tpu.memory_space<vmem>>) attributes {dimension_semantics = [#tpu.dimension_semantics<parallel>], iteration_bounds = array<i64: 1>, scalar_prefetch = 0 : i64, scratch_operands = 0 : i64, tpu.core_type = #tpu.core_type<tc>, window_params = [{transform_indices = @transform_0, window_bounds = array<i64: 16, 128>}, {transform_indices = @transform_1, window_bounds = array<i64: 16, 1>}, {transform_indices = @transform_2, window_bounds = array<i64: 1, 8, 128>}]} {
    %c0 = arith.constant 0 : index
    %c0_0 = arith.constant 0 : index
    %0 = vector.load %arg1[%c0, %c0_0] : memref<16x128xf32, #tpu.memory_space<vmem>>, vector<16x128xf32>
    %c0_1 = arith.constant 0 : index
    %c0_2 = arith.constant 0 : index
    %1 = vector.load %arg2[%c0_1, %c0_2] : memref<16x1xi32, #tpu.memory_space<vmem>>, vector<16x1xi32>
    %c16_i32 = arith.constant 16 : i32
    %2 = arith.muli %arg0, %c16_i32 : i32
    %3 = tpu.iota {dimensions = array<i32: 0>} : vector<16x1xi32>
    %4 = vector.broadcast %2 : i32 to vector<16x1xi32>
    %5 = arith.addi %4, %3 : vector<16x1xi32>
    %c16_i32_3 = arith.constant 16 : i32
    %6 = vector.broadcast %c16_i32_3 : i32 to vector<16x1xi32>
    %7 = arith.cmpi slt, %5, %6 : vector<16x1xi32>
    %c-100_i32 = arith.constant -100 : i32
    %8 = vector.broadcast %c-100_i32 : i32 to vector<16x1xi32>
    %9 = arith.cmpi ne, %1, %8 : vector<16x1xi32>
    %10 = arith.andi %7, %9 : vector<16x1xi1>
    %cst = arith.constant dense<0xFF800000> : vector<16xf32>
    %11 = vector.multi_reduction <maximumf>, %0, %cst [1] : vector<16x128xf32> to vector<16xf32>
    %12 = vector.shape_cast %11 : vector<16xf32> to vector<16x1xf32>
    %13 = vector.broadcast %12 : vector<16x1xf32> to vector<16x128xf32>
    %14 = arith.subf %0, %13 : vector<16x128xf32>
    %15 = math.exp %14 : vector<16x128xf32>
    %cst_4 = arith.constant dense<0.000000e+00> : vector<16xf32>
    %16 = vector.multi_reduction <add>, %15, %cst_4 [1] : vector<16x128xf32> to vector<16xf32>
    %17 = vector.shape_cast %16 : vector<16xf32> to vector<16x1xf32>
    %18 = math.log %17 : vector<16x1xf32>
    %19 = arith.addf %18, %12 : vector<16x1xf32>
    %c0_i32 = arith.constant 0 : i32
    %c127_i32 = arith.constant 127 : i32
    %20 = vector.broadcast %c0_i32 : i32 to vector<16x1xi32>
    %21 = arith.maxsi %20, %1 : vector<16x1xi32>
    %22 = vector.broadcast %c127_i32 : i32 to vector<16x1xi32>
    %23 = arith.minsi %22, %21 : vector<16x1xi32>
    %24 = tpu.iota {dimensions = array<i32: 1>} : vector<16x128xi32>
    %25 = vector.broadcast %23 : vector<16x1xi32> to vector<16x128xi32>
    %26 = arith.cmpi eq, %24, %25 : vector<16x128xi32>
    %cst_5 = arith.constant 0.000000e+00 : f32
    %27 = vector.broadcast %cst_5 : f32 to vector<16x128xf32>
    %28 = arith.select %26, %0, %27 : vector<16x128xi1>, vector<16x128xf32>
    %cst_6 = arith.constant dense<0.000000e+00> : vector<16xf32>
    %29 = vector.multi_reduction <add>, %28, %cst_6 [1] : vector<16x128xf32> to vector<16xf32>
    %30 = vector.shape_cast %29 : vector<16xf32> to vector<16x1xf32>
    %cst_7 = arith.constant dense<0.000000e+00> : vector<16xf32>
    %31 = vector.multi_reduction <add>, %0, %cst_7 [1] : vector<16x128xf32> to vector<16xf32>
    %32 = vector.shape_cast %31 : vector<16xf32> to vector<16x1xf32>
    %33 = arith.subf %30, %19 : vector<16x1xf32>
    %cst_8 = arith.constant 1.280000e+02 : f32
    %34 = vector.broadcast %cst_8 : f32 to vector<16x1xf32>
    %35 = arith.mulf %34, %19 : vector<16x1xf32>
    %36 = arith.subf %32, %35 : vector<16x1xf32>
    %cst_9 = arith.constant -0.899212599 : f32
    %37 = vector.broadcast %cst_9 : f32 to vector<16x1xf32>
    %38 = arith.mulf %37, %33 : vector<16x1xf32>
    %cst_10 = arith.constant 7.87401571E-4 : f32
    %39 = vector.broadcast %cst_10 : f32 to vector<16x1xf32>
    %40 = arith.mulf %39, %36 : vector<16x1xf32>
    %41 = arith.subf %38, %40 : vector<16x1xf32>
    %cst_11 = arith.constant 0.000000e+00 : f32
    %42 = vector.broadcast %cst_11 : f32 to vector<16x1xf32>
    %43 = arith.select %10, %41, %42 : vector<16x1xi1>, vector<16x1xf32>
    %44 = vector.shape_cast %43 : vector<16x1xf32> to vector<1x16x1xf32>
    %cst_12 = arith.constant dense<0.000000e+00> : vector<1xf32>
    %45 = vector.multi_reduction <add>, %44, %cst_12 [1, 2] : vector<1x16x1xf32> to vector<1xf32>
    %46 = vector.shape_cast %45 : vector<1xf32> to vector<1x1x1xf32>
    %47 = vector.extract %46[0, 0, 0] : f32 from vector<1x1x1xf32>
    %48 = arith.extui %10 : vector<16x1xi1> to vector<16x1xi32>
    %49 = arith.sitofp %48 : vector<16x1xi32> to vector<16x1xf32>
    %50 = vector.shape_cast %49 : vector<16x1xf32> to vector<1x16x1xf32>
    %cst_13 = arith.constant dense<0.000000e+00> : vector<1xf32>
    %51 = vector.multi_reduction <add>, %50, %cst_13 [1, 2] : vector<1x16x1xf32> to vector<1xf32>
    %52 = vector.shape_cast %51 : vector<1xf32> to vector<1x1x1xf32>
    %53 = vector.extract %52[0, 0, 0] : f32 from vector<1x1x1xf32>
    %54 = tpu.iota {dimensions = array<i32: 1>} : vector<1x8x128xi32>
    %55 = tpu.iota {dimensions = array<i32: 2>} : vector<1x8x128xi32>
    %c0_i32_14 = arith.constant 0 : i32
    %56 = vector.broadcast %c0_i32_14 : i32 to vector<1x8x128xi32>
    %57 = arith.cmpi eq, %54, %56 : vector<1x8x128xi32>
    %c0_i32_15 = arith.constant 0 : i32
    %58 = vector.broadcast %c0_i32_15 : i32 to vector<1x8x128xi32>
    %59 = arith.cmpi eq, %55, %58 : vector<1x8x128xi32>
    %60 = arith.andi %57, %59 : vector<1x8x128xi1>
    %cst_16 = arith.constant 0.000000e+00 : f32
    %61 = vector.broadcast %47 : f32 to vector<1x8x128xf32>
    %62 = vector.broadcast %cst_16 : f32 to vector<1x8x128xf32>
    %63 = arith.select %60, %61, %62 : vector<1x8x128xi1>, vector<1x8x128xf32>
    %c0_i32_17 = arith.constant 0 : i32
    %64 = vector.broadcast %c0_i32_17 : i32 to vector<1x8x128xi32>
    %65 = arith.cmpi eq, %54, %64 : vector<1x8x128xi32>
    %c1_i32 = arith.constant 1 : i32
    %66 = vector.broadcast %c1_i32 : i32 to vector<1x8x128xi32>
    %67 = arith.cmpi eq, %55, %66 : vector<1x8x128xi32>
    %68 = arith.andi %65, %67 : vector<1x8x128xi1>
    %cst_18 = arith.constant 0.000000e+00 : f32
    %69 = vector.broadcast %53 : f32 to vector<1x8x128xf32>
    %70 = vector.broadcast %cst_18 : f32 to vector<1x8x128xf32>
    %71 = arith.select %68, %69, %70 : vector<1x8x128xi1>, vector<1x8x128xf32>
    %72 = arith.addf %63, %71 : vector<1x8x128xf32>
    %c0_19 = arith.constant 0 : index
    %c0_20 = arith.constant 0 : index
    %c0_21 = arith.constant 0 : index
    %73 = vector.load %arg3[%c0_19, %c0_20, %c0_21] : memref<1x8x128xf32, #tpu.memory_space<vmem>>, vector<1x8x128xf32>
    tpu.vector_store %arg3[%c0_19, %c0_20, %c0_21], %72 {strides = array<i32>} : memref<1x8x128xf32, #tpu.memory_space<vmem>>, vector<1x8x128xf32>,
    return
  }
  func.func @transform_0(%arg0: i32) -> (i32, i32) {
    %c0_i32 = arith.constant 0 : i32
    %c0_i32_0 = arith.constant 0 : i32
    return %arg0, %c0_i32 : i32, i32
  }
  func.func @transform_1(%arg0: i32) -> (i32, i32) {
    %c0_i32 = arith.constant 0 : i32
    %c0_i32_0 = arith.constant 0 : i32
    return %arg0, %c0_i32 : i32, i32
  }
  func.func @transform_2(%arg0: i32) -> (i32, i32, i32) {
    %c0_i32 = arith.constant 0 : i32
    %c0_i32_0 = arith.constant 0 : i32
    %c0_i32_1 = arith.constant 0 : i32
    return %arg0, %c0_i32, %c0_i32_0 : i32, i32, i32
  }
}

</mosaic_0001>

<bundles_post_ra>
// kernel: tpu_custom_call.1
= control target key start
LH: loop header
LB: loop body
LE: loop exit
PB: predicated region body
PF: predicated region fallthrough
CT: control target
= control target key end

     0   :  { %v188_v2 = vmov 0   ;;  %s248_s0 = inlined_call_operand.vmem [shape: f32[16,128], index: 0, kind: input, shape index: {}]   ;;  %s249_s1 = inlined_call_operand.vmem [shape: s32[16,1], index: 1, kind: input, shape index: {}]   ;;  %s250_s2 = inlined_call_operand.hbm [shape: f32[1,8,128], index: 2, kind: output, shape index: {}]  }
   0x1   :  { %v12_v0 = vld [vmem:[%s248_s0] sm:$0xff]  ;;  %154 = vset.pattern.permute.xlu1 %v188_v2  ;;  %v218_v3 = vld [vmem:[%s249_s1 + $0x8] sm:$0xff] }
   0x2   :  { %v212_v1 = vld [vmem:[%s249_s1] sm:$0xff]  ;;  %29 = vmax.xlane.f32.xlu0 %v12_v0 }
   0x3   :  { %vm49_vm0 = vcmp.gt.s32.totalorder %v212_v1, 0 }
   0x4   :  { %7 = vsyncpa [#allocation3], 0  ;;  %v13_v4 = vld [vmem:[%s248_s0 + $0x8] sm:$0xff]  ;;  %v50_v5 = vsel %vm49_vm0, %v212_v1, 0  ;;  %vm51_vm1 = vcmp.gt.s32.totalorder %v218_v3, 0  ;;  %155 = vset.pattern.permute.xlu0 %v188_v2  ;;  %v17_v14 = vlaneseq  ;;  %vm25_vm6 = vcmp.ne.s32.totalorder %v212_v1, 4294967196 }
   0x5   :  { %vm53_vm2 = vcmp.lt.s32.totalorder %v50_v5, 127  ;;  %v52_v6 = vsel %vm51_vm1, %v218_v3, 0  ;;  %vm26_vm7 = vcmp.ne.s32.totalorder %v218_v3, 4294967196  ;;  %vm91_vm8 = vcmask 7168   ;;  %s190_s17 = smov [#allocation2]  }
   0x6   :  { %v54_v7 = vsel %vm53_vm2, %v50_v5, 127  ;;  %vm55_vm3 = vcmp.lt.s32.totalorder %v52_v6, 127  ;;  %31 = vmax.xlane.f32.xlu0 %v13_v4  ;;  %v227_v17 = vand.u32 127, %v17_v14  ;;  %v189_v48 = vmov 0.0   ;;  %s137_s18 = sshll.u32 %s190_s17, 4  ;;  %s138_s18 = int_to_ptr.vmem [resolvable:$true] %s137_s18 }
   0x7   :  { %60 = vperm.xlu1 %154, %v54_v7   ;;  %v56_v8 = vsel %vm55_vm3, %v52_v6, 127  ;;  %v145_v49 = vsel %vm25_vm6, 1.0, %v189_v48  ;;  %v146_v50 = vsel %vm26_vm7, 1.0, %v189_v48  ;;  %s164_s19 = scalar_lea.vmem %s138_s18, 128  ;;  %p169_p1 = scmp.lt.s32.totalorder %s138_s18, %s138_s18 }
   0x8   :  { %v108_v54 = vsel %vm91_vm8, %v145_v49, 0.0  ;;  %v109_v55 = vsel %vm91_vm8, %v146_v50, 0.0  ;;  %vm121_vm10 = vcmp.eq.s32.totalorder %v227_v17, 0  ;;  %vm125_vm11 = vcmp.eq.s32.totalorder %v227_v17, 1  ;;  %p165_p0 = scmp.ne.s32.totalorder %s138_s18, %s164_s19  ;;  %p170_p2 = scmp.lt.s32.totalorder %s164_s19, %s164_s19 }
   0x9   :  { %v110_v57 = vadd.f32 %v109_v55, %v108_v54 }
   0xa   :  { %p171_p3 = por %p170_p2, %p169_p1 }
   0xb   :  { %63 = vperm.xlu1 %154, %v56_v8   ;;  %v18_v8 = vshrl.u32 %v17_v14, 7 }
   0xc   :  { %p172_p4 = pnand %p171_p3, %p165_p0 }
   0xd   :  { %vm120_vm9 = vcmp.eq.s32.totalorder %v18_v8, 0 }
   0xe   :  { %vm122_vm12 = vmand %vm120_vm9, %vm121_vm10 }
   0xf   :  { %vm126_vm13 = vmand %vm120_vm9, %vm125_vm11 }
  0x86   :  { %v61_v16 = vpop.permute.xlu1 %60 }
  0x87   :  { %vm65_vm4 = vcmp.eq.s32.totalorder %v227_v17, %v61_v16 }
  0x88   :  { %v67_v20 = vsel %vm65_vm4, %v12_v0, 0.0 }
  0x8a   :  { %v64_v19 = vpop.permute.xlu1 %63 }
  0x8b   :  { %vm66_vm5 = vcmp.eq.s32.totalorder %v227_v17, %v64_v19 }
  0x8c   :  { %v68_v22 = vsel %vm66_vm5, %v13_v4, 0.0 }
  0x8f   :  { %v30_v9 = vpop.xlane.xlu0 %29 }
  0x90   :  { %v33_v10 = vsub.f32 %v12_v0, %v30_v9 }
  0x92   :  { %v35_v11 = vmul.f32 1.442695, %v33_v10 }
  0x93   :  { %v32_v12 = vpop.xlane.xlu0 %31 }
  0x94   :  { %156 = vpow2.f32 %v35_v11  ;;  %v34_v13 = vsub.f32 %v13_v4, %v32_v12 }
  0x96   :  { %v37_v15 = vmul.f32 1.442695, %v34_v13 }
  0x98   :  { %158 = vpow2.f32 %v37_v15 }
  0x9e   :  { %v157_v18 = vpop.eup %156 }
  0x9f   :  { %39 = vadd.xlane.f32.xlu0 %v157_v18 }
  0xa2   :  { %v159_v21 = vpop.eup %158 }
  0xa3   :  { %41 = vadd.xlane.f32.xlu1 %v159_v21  ;;  %69 = vadd.xlane.f32.xlu0 %v67_v20 }
  0xa7   :  { %71 = vadd.xlane.f32.xlu0 %v68_v22 }
  0xab   :  { %73 = vadd.xlane.f32.xlu0 %v12_v0 }
  0xaf   :  { %75 = vadd.xlane.f32.xlu0 %v13_v4 }
 0x12c   :  { %v40_v23 = vpop.xlane.xlu0 %39 }
 0x12d   :  { %160 = vlog2.f32 %v40_v23 }
 0x130   :  { %v42_v24 = vpop.xlane.xlu1 %41  ;;  %v70_v25 = vpop.xlane.xlu0 %69 }
 0x131   :  { %162 = vlog2.f32 %v42_v24 }
 0x134   :  { %v72_v26 = vpop.xlane.xlu0 %71 }
 0x137   :  { %v161_v27 = vpop.eup %160 }
 0x138   :  { %v44_v28 = vmul.f32 0.6931472, %v161_v27  ;;  %v74_v29 = vpop.xlane.xlu0 %73 }
 0x13a   :  { %v47_v30 = vadd.f32 %v44_v28, %v30_v9 }
 0x13b   :  { %v163_v31 = vpop.eup %162 }
 0x13c   :  { %v46_v32 = vmul.f32 0.6931472, %v163_v31  ;;  %v77_v33 = vsub.f32 %v70_v25, %v47_v30  ;;  %v79_v34 = vmul.f32 128.0, %v47_v30  ;;  %v76_v37 = vpop.xlane.xlu0 %75 }
 0x13e   :  { %v48_v35 = vadd.f32 %v46_v32, %v32_v12  ;;  %v81_v36 = vsub.f32 %v74_v29, %v79_v34  ;;  %v83_v38 = vmul.f32 -0.8992126, %v77_v33 }
 0x140   :  { %v78_v39 = vsub.f32 %v72_v26, %v48_v35  ;;  %v85_v40 = vmul.f32 0.0007874016, %v81_v36  ;;  %v80_v41 = vmul.f32 128.0, %v48_v35 }
 0x142   :  { %v87_v42 = vsub.f32 %v83_v38, %v85_v40  ;;  %v82_v43 = vsub.f32 %v76_v37, %v80_v41  ;;  %v84_v44 = vmul.f32 -0.8992126, %v78_v39 }
 0x144   :  { %v86_v45 = vmul.f32 0.0007874016, %v82_v43  ;;  %v89_v47 = vsel %vm25_vm6, %v87_v42, 0.0 }
 0x145   :  { %v92_v52 = vsel %vm91_vm8, %v89_v47, 0.0 }
 0x146   :  { %v88_v46 = vsub.f32 %v84_v44, %v86_v45 }
 0x148   :  { %v90_v51 = vsel %vm26_vm7, %v88_v46, 0.0 }
 0x149   :  { %v93_v53 = vsel %vm91_vm8, %v90_v51, 0.0 }
 0x14a   :  { %v94_v56 = vadd.f32 %v93_v53, %v92_v52 }
 0x14c   :  { %95 = vadd.xlane.f32.xlu0 %v94_v56 }
 0x150   :  { %111 = vadd.xlane.f32.xlu0 %v110_v57 }
 0x1d9   :  { %v96_v58 = vpop.xlane.xlu0 %95 }
 0x1da   :  { %v97_v59 = vrot.slane %v96_v58, 4 }
 0x1dc   :  { %v98_v60 = vadd.f32 %v97_v59, %v96_v58 }
 0x1dd   :  { %v112_v61 = vpop.xlane.xlu0 %111 }
 0x1de   :  { %v99_v62 = vrot.slane %v98_v60, 2  ;;  %v113_v63 = vrot.slane %v112_v61, 4 }
 0x1e0   :  { %v114_v0 = vadd.f32 %v113_v63, %v112_v61  ;;  %v100_v1 = vadd.f32 %v99_v62, %v98_v60 }
 0x1e2   :  { %v115_v2 = vrot.slane %v114_v0, 2  ;;  %v101_v3 = vrot.slane %v100_v1, 1 }
 0x1e4   :  { %v116_v4 = vadd.f32 %v115_v2, %v114_v0  ;;  %v102_v5 = vadd.f32 %v101_v3, %v100_v1 }
 0x1e6   :  { %147 = vpush %v102_v5  ;;  %v117_v6 = vrot.slane %v116_v4, 1 }
 0x1e8   :  { %v118_v7 = vadd.f32 %v117_v6, %v116_v4 }
 0x1ea   :  { %149 = vpush %v118_v7 }
 0x217   :  { %s148_s0 = spop %147 }
 0x218   :  { %v123_v9 = vstv %s148_s0 }
 0x219   :  { %v124_v11 = vsel %vm122_vm12, %v123_v9, 0.0 }
 0x21b   :  { %s150_s1 = spop %149 }
 0x21c   :  { %v127_v10 = vstv %s150_s1 }
 0x21d   :  { %v128_v12 = vsel %vm126_vm13, %v127_v10, 0.0 }
 0x21e   :  { %v129_v13 = vadd.f32 %v128_v12, %v124_v11 }
 0x220   :  { %130 = vst [vmem:[#allocation2] sm:$0xff] %v129_v13 }
 0x221   :  { %175 = shalt.err (!%p172_p4)
}
 0x222   :  { %s176_s22 = scalar_lea.hbm %s250_s2, 128 }
 0x223   :  { %p177_p5 = scmp.ne.s32.totalorder %s250_s2, %s176_s22  ;;  %p180_p6 = scmp.lt.u32.totalorder %s176_s22, %s250_s2 }
 0x225   :  { %p182_p7 = pnand %p180_p6, %p177_p5 }
 0x227   :  { %185 = shalt.err (!%p182_p7)
}
 0x228   :  { %140 = dma.vmem_to_hbm [thread:$0]  %s138_s18, 128, %s250_s2, [#allocation3]  }
 0x229   :  { %186 = dma.done.wait [#allocation3], 128  }
 0x22a   :  { %187 = vsyncadd [#allocation3], 4294967168 }
 0x22b   :  { %144 = vsyncpa [#allocation3], 1 }

</bundles_post_ra>
